<compile_context>
chip_gen: v6e
topology: v6e:2x2x1
jax: 0.10.0
libtpu: 0.0.40
codegen_flags: <defaults>
</compile_context>

<pallas_src>
import math

import jax
import jax.numpy as jnp
from jax.experimental import pallas as pl
from jax.experimental.pallas import tpu as pltpu

LATENT_DIM = 100
HIDDEN = (128, 256, 512)


def _round_up(x, m):
    return ((x + m - 1) // m) * m


def _cdiv(a, b):
    return -(-a // b)


def generator_kernel(x_ref,
                     w1_ref, b1_ref,
                     w2_ref, b2_ref,
                     w3_ref, b3_ref,
                     w4_ref, b4_ref,
                     o_ref):
    """Fused 4-layer MLP forward for one batch tile.

    All matmuls hit the MXU with bf16 operands and f32 accumulation; ReLU on
    the VPU, Tanh on the EUP.  Weights (<0.5 MiB in bf16) are whole-array
    blocks with a constant index_map, so they stay resident in VMEM across
    grid steps.
    """
    h = jnp.dot(x_ref[...], w1_ref[...],
                preferred_element_type=jnp.float32) + b1_ref[...]
    h = jnp.maximum(h, 0.0).astype(jnp.bfloat16)

    h = jnp.dot(h, w2_ref[...],
                preferred_element_type=jnp.float32) + b2_ref[...]
    h = jnp.maximum(h, 0.0).astype(jnp.bfloat16)

    h = jnp.dot(h, w3_ref[...],
                preferred_element_type=jnp.float32) + b3_ref[...]
    h = jnp.maximum(h, 0.0).astype(jnp.bfloat16)

    h = jnp.dot(h, w4_ref[...],
                preferred_element_type=jnp.float32) + b4_ref[...]
    o_ref[...] = jnp.tanh(h).astype(o_ref.dtype)


def prepare_generator_params(params):
    """One-time pad + cast of the f32 (in, out) params to kernel layout.

    Latent dim is padded to a multiple of 128 (zero rows of w1), output dim
    padded to a multiple of 128 (zero cols of w4 / b4), weights cast to bf16.
    Call this once; pass the result to generator_forward on every call.
    """
    D = params["w1"].shape[0]
    out_dim = params["w4"].shape[1]
    D_pad = _round_up(D, 128)
    out_pad = _round_up(out_dim, 128)
    return {
        "w1": jnp.pad(params["w1"], ((0, D_pad - D), (0, 0))).astype(jnp.bfloat16),
        "b1": params["b1"].astype(jnp.float32),
        "w2": params["w2"].astype(jnp.bfloat16),
        "b2": params["b2"].astype(jnp.float32),
        "w3": params["w3"].astype(jnp.bfloat16),
        "b3": params["b3"].astype(jnp.float32),
        "w4": jnp.pad(params["w4"],
                      ((0, 0), (0, out_pad - out_dim))).astype(jnp.bfloat16),
        "b4": jnp.pad(params["b4"],
                      ((0, 0), (0, out_pad - out_dim))).astype(jnp.float32),
        "out_dim": out_dim,
    }


def _choose_tiling(B, batch_tile):
    """Pick (tile, n_tiles, B_pad).

    * No rounding of B up to a full batch_tile multiple (ragged batches only
      pad to the next multiple of 16).
    * bf16 activations => batch tile must be a multiple of 16.
    * For B >= 32 force an even number of >= 2 grid steps so the 'parallel'
      grid axis can shard across v7x's two TensorCores.
    """
    n_tiles = max(1, _cdiv(B, batch_tile))
    if B >= 32:
        n_tiles = max(2, n_tiles)
        if n_tiles % 2:
            n_tiles += 1
    tile = _round_up(_cdiv(B, n_tiles), 16)
    B_pad = tile * n_tiles
    return tile, n_tiles, B_pad


def generator_forward(x, prepared, *, batch_tile=512):
    """Run the Generator forward pass.

    x: (B, latent_dim) float32
    prepared: output of prepare_generator_params (bf16 padded weights, f32
              biases).  Returns (B, out_dim) float32.
    """
    B, D = x.shape
    out_dim = prepared["out_dim"]
    D_pad = prepared["w1"].shape[0]
    out_pad = prepared["w4"].shape[1]

    tile, n_tiles, B_pad = _choose_tiling(B, batch_tile)

    # Only the batch input is padded/cast per call; weights were prepared once.
    x_p = jnp.pad(x, ((0, B_pad - B), (0, D_pad - D))).astype(jnp.bfloat16)

    def full_spec(shape):
        # Whole-array block, same block for every grid step (weights resident).
        return pl.BlockSpec(shape, lambda i: (0,) * len(shape))

    in_specs = [
        pl.BlockSpec((tile, D_pad), lambda i: (i, 0)),  # x tile
        full_spec(prepared["w1"].shape), full_spec(prepared["b1"].shape),
        full_spec(prepared["w2"].shape), full_spec(prepared["b2"].shape),
        full_spec(prepared["w3"].shape), full_spec(prepared["b3"].shape),
        full_spec(prepared["w4"].shape), full_spec(prepared["b4"].shape),
    ]
    out_spec = pl.BlockSpec((tile, out_pad), lambda i: (i, 0))

    h1, h2, h3 = HIDDEN
    flops = 2 * B_pad * (D_pad * h1 + h1 * h2 + h2 * h3 + h3 * out_pad)
    weight_bytes = sum(prepared[k].size * prepared[k].dtype.itemsize
                       for k in ("w1", "b1", "w2", "b2", "w3", "b3", "w4", "b4"))
    bytes_accessed = x_p.size * 2 + weight_bytes + B_pad * out_pad * 2

    out_padded = pl.pallas_call(
        generator_kernel,
        out_shape=jax.ShapeDtypeStruct((B_pad, out_pad), jnp.bfloat16),
        grid_spec=pltpu.PrefetchScalarGridSpec(
            num_scalar_prefetch=0,
            grid=(n_tiles,),
            in_specs=in_specs,
            out_specs=out_spec,
        ),
        compiler_params=pltpu.CompilerParams(
            dimension_semantics=("parallel",),
            vmem_limit_bytes=16 << 20,
        ),
        cost_estimate=pl.CostEstimate(
            flops=flops,
            transcendentals=B_pad * out_pad,
            bytes_accessed=bytes_accessed,
        ),
    )(x_p,
      prepared["w1"], prepared["b1"],
      prepared["w2"], prepared["b2"],
      prepared["w3"], prepared["b3"],
      prepared["w4"], prepared["b4"])

    # Slice padded lanes/rows off and hand back f32 to the caller.
    return out_padded[:B, :out_dim].astype(jnp.float32)


def init_generator_params(key, latent_dim, output_dim):
    """Deterministic init mimicking PyTorch nn.Linear default:
    U(-1/sqrt(fan_in), 1/sqrt(fan_in)) for weights and biases.
    Weights stored as (in_features, out_features), float32."""
    dims = (latent_dim,) + HIDDEN + (output_dim,)
    params = {}
    for idx in range(4):
        fan_in, fan_out = dims[idx], dims[idx + 1]
        key, kw, kb = jax.random.split(key, 3)
        bound = 1.0 / math.sqrt(fan_in)
        params[f"w{idx+1}"] = jax.random.uniform(
            kw, (fan_in, fan_out), jnp.float32, minval=-bound, maxval=bound)
        params[f"b{idx+1}"] = jax.random.uniform(
            kb, (1, fan_out), jnp.float32, minval=-bound, maxval=bound)
    return params


def generator_ref(x, params):
    """Plain-JAX f32 reference of the same forward pass (for sanity check)."""
    h = jnp.maximum(x @ params["w1"] + params["b1"], 0.0)
    h = jnp.maximum(h @ params["w2"] + params["b2"], 0.0)
    h = jnp.maximum(h @ params["w3"] + params["b3"], 0.0)
    return jnp.tanh(h @ params["w4"] + params["b4"])


if __name__ == "__main__":
    key = jax.random.PRNGKey(0)
    key, kx1, kx2 = jax.random.split(key, 3)

    output_dim = 32  # synthetic output size for the GAN generator
    params = init_generator_params(key, LATENT_DIM, output_dim)
    prepared = prepare_generator_params(params)  # pad + bf16 cast, done once

    # Small-batch path (single grid step).
    batch = 16
    x = jax.random.normal(kx1, (batch, LATENT_DIM), jnp.float32)
    out = jax.block_until_ready(generator_forward(x, prepared))
    ref = generator_ref(x, params)
    assert out.shape == (batch, output_dim)
    # bf16 MXU feed + bf16 output with f32 accumulation; tanh output in [-1,1],
    # so an absolute tolerance is appropriate.
    assert jnp.max(jnp.abs(out - ref)) < 3e-2, "mismatch vs reference (B=16)"

    # Ragged multi-tile path (B >= 32 -> 2 grid steps, tile rounded to 16).
    batch2 = 48
    x2 = jax.random.normal(kx2, (batch2, LATENT_DIM), jnp.float32)
    out2 = jax.block_until_ready(generator_forward(x2, prepared))
    ref2 = generator_ref(x2, params)
    assert out2.shape == (batch2, output_dim)
    assert jnp.max(jnp.abs(out2 - ref2)) < 3e-2, "mismatch vs reference (B=48)"

    # TODO(synk): for latency-critical serving, a cross-pallas_call weight
    # prefetch (semaphore + VMEM ref future) could hide the ~0.5 MiB weight DMA.
    print("KERNEL_OK")
</pallas_src>

<mosaic_0001>
module attributes {stable_mosaic.version = 11 : i64} {
  func.func @generator_kernel(%arg0: i32, %arg1: memref<16x128xbf16, #tpu.memory_space<vmem>>, %arg2: memref<128x128xbf16, #tpu.memory_space<vmem>>, %arg3: memref<1x128xf32, #tpu.memory_space<vmem>>, %arg4: memref<128x256xbf16, #tpu.memory_space<vmem>>, %arg5: memref<1x256xf32, #tpu.memory_space<vmem>>, %arg6: memref<256x512xbf16, #tpu.memory_space<vmem>>, %arg7: memref<1x512xf32, #tpu.memory_space<vmem>>, %arg8: memref<512x128xbf16, #tpu.memory_space<vmem>>, %arg9: memref<1x128xf32, #tpu.memory_space<vmem>>, %arg10: memref<16x128xbf16, #tpu.memory_space<vmem>>) attributes {dimension_semantics = [#tpu.dimension_semantics<parallel>], iteration_bounds = array<i64: 1>, scalar_prefetch = 0 : i64, scratch_operands = 0 : i64, tpu.core_type = #tpu.core_type<tc>, window_params = [{transform_indices = @transform_0, window_bounds = array<i64: 16, 128>}, {pipeline_mode = #tpu.pipeline_mode<synchronous>, transform_indices = @transform_1, window_bounds = array<i64: 128, 128>}, {pipeline_mode = #tpu.pipeline_mode<synchronous>, transform_indices = @transform_2, window_bounds = array<i64: 1, 128>}, {pipeline_mode = #tpu.pipeline_mode<synchronous>, transform_indices = @transform_3, window_bounds = array<i64: 128, 256>}, {pipeline_mode = #tpu.pipeline_mode<synchronous>, transform_indices = @transform_4, window_bounds = array<i64: 1, 256>}, {pipeline_mode = #tpu.pipeline_mode<synchronous>, transform_indices = @transform_5, window_bounds = array<i64: 256, 512>}, {pipeline_mode = #tpu.pipeline_mode<synchronous>, transform_indices = @transform_6, window_bounds = array<i64: 1, 512>}, {pipeline_mode = #tpu.pipeline_mode<synchronous>, transform_indices = @transform_7, window_bounds = array<i64: 512, 128>}, {pipeline_mode = #tpu.pipeline_mode<synchronous>, transform_indices = @transform_8, window_bounds = array<i64: 1, 128>}, {transform_indices = @transform_9, window_bounds = array<i64: 16, 128>}]} {
    %c0 = arith.constant 0 : index
    %c0_0 = arith.constant 0 : index
    %0 = vector.load %arg1[%c0, %c0_0] : memref<16x128xbf16, #tpu.memory_space<vmem>>, vector<16x128xbf16>
    %c0_1 = arith.constant 0 : index
    %c0_2 = arith.constant 0 : index
    %1 = vector.load %arg2[%c0_1, %c0_2] : memref<128x128xbf16, #tpu.memory_space<vmem>>, vector<128x128xbf16>
    %cst = arith.constant dense<0.000000e+00> : vector<16x128xf32>
    %2 = tpu.matmul %0, %1, %cst {dimension_numbers = #tpu.dot_dimension_numbers<[1], [0], [0], [1], [0, 0, 1, 1], [], []>} : vector<16x128xbf16>, vector<128x128xbf16>, vector<16x128xf32> -> vector<16x128xf32>
    %c0_3 = arith.constant 0 : index
    %c0_4 = arith.constant 0 : index
    %3 = vector.load %arg3[%c0_3, %c0_4] : memref<1x128xf32, #tpu.memory_space<vmem>>, vector<1x128xf32>
    %4 = vector.broadcast %3 : vector<1x128xf32> to vector<16x128xf32>
    %5 = arith.addf %2, %4 : vector<16x128xf32>
    %cst_5 = arith.constant 0.000000e+00 : f32
    %6 = vector.broadcast %cst_5 : f32 to vector<16x128xf32>
    %7 = arith.maximumf %5, %6 : vector<16x128xf32>
    %8 = arith.truncf %7 : vector<16x128xf32> to vector<16x128xbf16>
    %c0_6 = arith.constant 0 : index
    %c0_7 = arith.constant 0 : index
    %9 = vector.load %arg4[%c0_6, %c0_7] : memref<128x256xbf16, #tpu.memory_space<vmem>>, vector<128x256xbf16>
    %cst_8 = arith.constant dense<0.000000e+00> : vector<16x256xf32>
    %10 = tpu.matmul %8, %9, %cst_8 {dimension_numbers = #tpu.dot_dimension_numbers<[1], [0], [0], [1], [0, 0, 1, 1], [], []>} : vector<16x128xbf16>, vector<128x256xbf16>, vector<16x256xf32> -> vector<16x256xf32>
    %c0_9 = arith.constant 0 : index
    %c0_10 = arith.constant 0 : index
    %11 = vector.load %arg5[%c0_9, %c0_10] : memref<1x256xf32, #tpu.memory_space<vmem>>, vector<1x256xf32>
    %12 = vector.broadcast %11 : vector<1x256xf32> to vector<16x256xf32>
    %13 = arith.addf %10, %12 : vector<16x256xf32>
    %cst_11 = arith.constant 0.000000e+00 : f32
    %14 = vector.broadcast %cst_11 : f32 to vector<16x256xf32>
    %15 = arith.maximumf %13, %14 : vector<16x256xf32>
    %16 = arith.truncf %15 : vector<16x256xf32> to vector<16x256xbf16>
    %c0_12 = arith.constant 0 : index
    %c0_13 = arith.constant 0 : index
    %17 = vector.load %arg6[%c0_12, %c0_13] : memref<256x512xbf16, #tpu.memory_space<vmem>>, vector<256x512xbf16>
    %cst_14 = arith.constant dense<0.000000e+00> : vector<16x512xf32>
    %18 = tpu.matmul %16, %17, %cst_14 {dimension_numbers = #tpu.dot_dimension_numbers<[1], [0], [0], [1], [0, 0, 1, 1], [], []>} : vector<16x256xbf16>, vector<256x512xbf16>, vector<16x512xf32> -> vector<16x512xf32>
    %c0_15 = arith.constant 0 : index
    %c0_16 = arith.constant 0 : index
    %19 = vector.load %arg7[%c0_15, %c0_16] : memref<1x512xf32, #tpu.memory_space<vmem>>, vector<1x512xf32>
    %20 = vector.broadcast %19 : vector<1x512xf32> to vector<16x512xf32>
    %21 = arith.addf %18, %20 : vector<16x512xf32>
    %cst_17 = arith.constant 0.000000e+00 : f32
    %22 = vector.broadcast %cst_17 : f32 to vector<16x512xf32>
    %23 = arith.maximumf %21, %22 : vector<16x512xf32>
    %24 = arith.truncf %23 : vector<16x512xf32> to vector<16x512xbf16>
    %c0_18 = arith.constant 0 : index
    %c0_19 = arith.constant 0 : index
    %25 = vector.load %arg8[%c0_18, %c0_19] : memref<512x128xbf16, #tpu.memory_space<vmem>>, vector<512x128xbf16>
    %cst_20 = arith.constant dense<0.000000e+00> : vector<16x128xf32>
    %26 = tpu.matmul %24, %25, %cst_20 {dimension_numbers = #tpu.dot_dimension_numbers<[1], [0], [0], [1], [0, 0, 1, 1], [], []>} : vector<16x512xbf16>, vector<512x128xbf16>, vector<16x128xf32> -> vector<16x128xf32>
    %c0_21 = arith.constant 0 : index
    %c0_22 = arith.constant 0 : index
    %27 = vector.load %arg9[%c0_21, %c0_22] : memref<1x128xf32, #tpu.memory_space<vmem>>, vector<1x128xf32>
    %28 = vector.broadcast %27 : vector<1x128xf32> to vector<16x128xf32>
    %29 = arith.addf %26, %28 : vector<16x128xf32>
    %30 = math.tanh %29 : vector<16x128xf32>
    %31 = arith.truncf %30 : vector<16x128xf32> to vector<16x128xbf16>
    %c0_23 = arith.constant 0 : index
    %c0_24 = arith.constant 0 : index
    %32 = vector.load %arg10[%c0_23, %c0_24] : memref<16x128xbf16, #tpu.memory_space<vmem>>, vector<16x128xbf16>
    tpu.vector_store %arg10[%c0_23, %c0_24], %31 {strides = array<i32>} : memref<16x128xbf16, #tpu.memory_space<vmem>>, vector<16x128xbf16>,
    return
  }
  func.func @transform_0(%arg0: i32) -> (i32, i32) {
    %c0_i32 = arith.constant 0 : i32
    %c0_i32_0 = arith.constant 0 : i32
    return %arg0, %c0_i32 : i32, i32
  }
  func.func @transform_1(%arg0: i32) -> (i32, i32) {
    %c0_i32 = arith.constant 0 : i32
    %c0_i32_0 = arith.constant 0 : i32
    %c0_i32_1 = arith.constant 0 : i32
    return %c0_i32, %c0_i32_0 : i32, i32
  }
  func.func @transform_2(%arg0: i32) -> (i32, i32) {
    %c0_i32 = arith.constant 0 : i32
    %c0_i32_0 = arith.constant 0 : i32
    %c0_i32_1 = arith.constant 0 : i32
    return %c0_i32, %c0_i32_0 : i32, i32
  }
  func.func @transform_3(%arg0: i32) -> (i32, i32) {
    %c0_i32 = arith.constant 0 : i32
    %c0_i32_0 = arith.constant 0 : i32
    %c0_i32_1 = arith.constant 0 : i32
    return %c0_i32, %c0_i32_0 : i32, i32
  }
  func.func @transform_4(%arg0: i32) -> (i32, i32) {
    %c0_i32 = arith.constant 0 : i32
    %c0_i32_0 = arith.constant 0 : i32
    %c0_i32_1 = arith.constant 0 : i32
    return %c0_i32, %c0_i32_0 : i32, i32
  }
  func.func @transform_5(%arg0: i32) -> (i32, i32) {
    %c0_i32 = arith.constant 0 : i32
    %c0_i32_0 = arith.constant 0 : i32
    %c0_i32_1 = arith.constant 0 : i32
    return %c0_i32, %c0_i32_0 : i32, i32
  }
  func.func @transform_6(%arg0: i32) -> (i32, i32) {
    %c0_i32 = arith.constant 0 : i32
    %c0_i32_0 = arith.constant 0 : i32
    %c0_i32_1 = arith.constant 0 : i32
    return %c0_i32, %c0_i32_0 : i32, i32
  }
  func.func @transform_7(%arg0: i32) -> (i32, i32) {
    %c0_i32 = arith.constant 0 : i32
    %c0_i32_0 = arith.constant 0 : i32
    %c0_i32_1 = arith.constant 0 : i32
    return %c0_i32, %c0_i32_0 : i32, i32
  }
  func.func @transform_8(%arg0: i32) -> (i32, i32) {
    %c0_i32 = arith.constant 0 : i32
    %c0_i32_0 = arith.constant 0 : i32
    %c0_i32_1 = arith.constant 0 : i32
    return %c0_i32, %c0_i32_0 : i32, i32
  }
  func.func @transform_9(%arg0: i32) -> (i32, i32) {
    %c0_i32 = arith.constant 0 : i32
    %c0_i32_0 = arith.constant 0 : i32
    return %arg0, %c0_i32 : i32, i32
  }
}

</mosaic_0001>

<bundles_post_ra>
// kernel: tpu_custom_call.1
= control target key start
LH: loop header
LB: loop body
LE: loop exit
PB: predicated region body
PF: predicated region fallthrough
CT: control target
= control target key end

     0   :  { %14 = vsyncpa [#allocation3], 0  ;;  %s1896_s0 = inlined_call_operand.hbm [shape: bf16[16,128], index: 0, kind: input, shape index: {}]   ;;  %s1897_s1 = inlined_call_operand.hbm [shape: bf16[128,128], index: 1, kind: input, shape index: {}]   ;;  %s1898_s2 = inlined_call_operand.vmem [shape: f32[1,128], index: 2, kind: input, shape index: {}]   ;;  %s1899_s3 = inlined_call_operand.hbm [shape: bf16[128,256], index: 3, kind: input, shape index: {}]   ;;  %s1900_s4 = inlined_call_operand.vmem [shape: f32[1,256], index: 4, kind: input, shape index: {}]   ;;  %s1901_s5 = inlined_call_operand.hbm [shape: bf16[256,512], index: 5, kind: input, shape index: {}]   ;;  %s1902_s6 = inlined_call_operand.vmem [shape: f32[1,512], index: 6, kind: input, shape index: {}]   ;;  %s1903_s7 = inlined_call_operand.hbm [shape: bf16[512,128], index: 7, kind: input, shape index: {}]   ;;  %s1904_s8 = inlined_call_operand.vmem [shape: f32[1,128], index: 8, kind: input, shape index: {}]   ;;  %s1905_s9 = inlined_call_operand.hbm [shape: bf16[16,128], index: 9, kind: output, shape index: {}]  }
   0x1   :  { %15 = vsyncpa [#allocation6], 0 }
   0x2   :  { %16 = vsyncpa [#allocation9], 0 }
   0x3   :  { %17 = vsyncpa [#allocation4], 0  ;;  %s1775_s30 = smov [#allocation5]   ;;  %s1776_s11 = smov [#allocation8]  }
   0x4   :  { %s35_s10 = sshll.u32 %s1775_s30, 4  ;;  %s63_s12 = sshll.u32 %s1776_s11, 4  ;;  %s36_s10 = int_to_ptr.vmem [resolvable:$true] %s35_s10  ;;  %s64_s12 = int_to_ptr.vmem [resolvable:$true] %s63_s12 }
   0x5   :  { %s1655_s13 = scalar_lea.vmem %s36_s10, 1024  ;;  %p1660_p1 = scmp.lt.s32.totalorder %s36_s10, %s36_s10 }
   0x6   :  { %p1656_p0 = scmp.ne.s32.totalorder %s36_s10, %s1655_s13  ;;  %p1661_p2 = scmp.lt.s32.totalorder %s1655_s13, %s1655_s13 }
   0x8   :  { %p1662_p3 = por %p1661_p2, %p1660_p1 }
   0xa   :  { %p1663_p4 = pnand %p1662_p3, %p1656_p0 }
   0xc   :  { %1666 = shalt.err (!%p1663_p4)
}
   0xd   :  { %s1777_s14 = smov 64   ;;  %s1778_s15 = smov 4  }
   0xe   :  { %41 = dma.hbm_to_vmem [thread:$0]  %s1897_s1, 1024, %s36_s10, [#allocation6], %s1777_s14, %s1777_s14, %s1778_s15  }
   0xf   :  { %s1675_s18 = scalar_lea.vmem %s64_s12, 8192  ;;  %p1680_p6 = scmp.lt.s32.totalorder %s64_s12, %s64_s12 }
  0x10   :  { %p1676_p5 = scmp.ne.s32.totalorder %s64_s12, %s1675_s18  ;;  %p1681_p7 = scmp.lt.s32.totalorder %s1675_s18, %s1675_s18 }
  0x12   :  { %p1682_p8 = por %p1681_p7, %p1680_p6 }
  0x14   :  { %p1683_p9 = pnand %p1682_p8, %p1676_p5 }
  0x16   :  { %1686 = shalt.err (!%p1683_p9)
}
  0x17   :  { %s1779_s19 = smov 256   ;;  %s1780_s20 = smov 16  }
  0x18   :  { %69 = dma.hbm_to_vmem [thread:$0]  %s1901_s5, 8192, %s64_s12, [#allocation9], %s1779_s19, %s1779_s19, %s1780_s20  }
  0x19   :  { %s1781_s23 = smov [#allocation2]   ;;  %s1782_s25 = smov [#allocation7]  }
  0x1a   :  { %s23_s24 = sshll.u32 %s1781_s23, 4  ;;  %s49_s26 = sshll.u32 %s1782_s25, 4  ;;  %s24_s24 = int_to_ptr.vmem [resolvable:$true] %s23_s24  ;;  %s50_s26 = int_to_ptr.vmem [resolvable:$true] %s49_s26 }
  0x1b   :  { %s1695_s1 = scalar_lea.vmem %s24_s24, 128  ;;  %p1700_p11 = scmp.lt.s32.totalorder %s24_s24, %s24_s24 }
  0x1c   :  { %p1696_p10 = scmp.ne.s32.totalorder %s24_s24, %s1695_s1  ;;  %p1701_p12 = scmp.lt.s32.totalorder %s1695_s1, %s1695_s1 }
  0x1e   :  { %p1702_p13 = por %p1701_p12, %p1700_p11 }
  0x20   :  { %p1703_p0 = pnand %p1702_p13, %p1696_p10 }
  0x22   :  { %1706 = shalt.err (!%p1703_p0)
}
  0x23   :  { %29 = dma.hbm_to_vmem [thread:$0]  %s1896_s0, 128, %s24_s24, [#allocation3], %s1777_s14, %s1777_s14, %s1778_s15  }
  0x24   :  { %s1715_s5 = scalar_lea.vmem %s50_s26, 2048  ;;  %p1720_p2 = scmp.lt.s32.totalorder %s50_s26, %s50_s26 }
  0x25   :  { %p1716_p1 = scmp.ne.s32.totalorder %s50_s26, %s1715_s5  ;;  %p1721_p3 = scmp.lt.s32.totalorder %s1715_s5, %s1715_s5 }
  0x27   :  { %p1722_p4 = por %p1721_p3, %p1720_p2 }
  0x29   :  { %p1723_p5 = pnand %p1722_p4, %p1716_p1 }
  0x2b   :  { %1726 = shalt.err (!%p1723_p5)
}
  0x2c   :  { %s1783_s29 = smov 128   ;;  %s1784_s30 = smov 8  }
  0x2d   :  { %55 = dma.hbm_to_vmem [thread:$0]  %s1899_s3, 2048, %s50_s26, [#allocation6], %s1783_s29, %s1783_s29, %s1784_s30  }
  0x2e   :  { %s1785_s12 = smov [#allocation10]  }
  0x2f   :  { %s77_s13 = sshll.u32 %s1785_s12, 4  ;;  %s78_s13 = int_to_ptr.vmem [resolvable:$true] %s77_s13 }
  0x30   :  { %s1735_s16 = scalar_lea.vmem %s78_s13, 4096  ;;  %p1740_p7 = scmp.lt.s32.totalorder %s78_s13, %s78_s13 }
  0x31   :  { %p1736_p6 = scmp.ne.s32.totalorder %s78_s13, %s1735_s16  ;;  %p1741_p8 = scmp.lt.s32.totalorder %s1735_s16, %s1735_s16 }
  0x33   :  { %p1742_p9 = por %p1741_p8, %p1740_p7 }
  0x35   :  { %p1743_p10 = pnand %p1742_p9, %p1736_p6 }
  0x37   :  { %1746 = shalt.err (!%p1743_p10)
}
  0x38   :  { %83 = dma.hbm_to_vmem [thread:$0]  %s1903_s7, 4096, %s78_s13, [#allocation9], %s1777_s14, %s1777_s14, %s1778_s15  }
  0x39   :  { %1767 = dma.done.wait [#allocation3], 128  }
  0x3a   :  { %1768 = vsyncadd [#allocation3], 4294967168 }
  0x3b   :  { %1769 = dma.done.wait [#allocation6], 3072  }
  0x3c   :  { %1770 = vsyncadd [#allocation6], 4294964224 }
  0x3d   :  { %1771 = dma.done.wait [#allocation9], 12288  }
  0x3e   :  { %1772 = vsyncadd [#allocation9], 4294955008  ;;  %v1786_v0 = vmov 0.0   ;;  %vm1787_vm0 = vmmov 0   ;;  %v1482_v1 = vld [vmem:[#allocation5 + $0x38] sm:$0xff]   ;;  %v1483_v2 = vld [vmem:[#allocation5 + $0x30] sm:$0xff]  }
  0x3f   :  { %1447 = vmatprep.subr.bf16.mxu0 %v1786_v0  ;;  %1463 = vmatprep.mubr.msk.bf16.mxu0 %vm1787_vm0, %v1786_v0  ;;  %v1484_v3 = vld [vmem:[#allocation5 + $0x28] sm:$0xff]   ;;  %v1485_v4 = vld [vmem:[#allocation5 + $0x20] sm:$0xff]   ;;  %v1491_v5 = vld [vmem:[#allocation7 + $0x74] ss:$8 sps:$4 sm:$0xff]   ;;  %v1788_v26 = vmov 0   ;;  %s1789_s21 = smov [#allocation11]  }
  0x40   :  { %1448 = vmatpush3.bf16.msra.mxu0 %v1482_v1  ;;  %v1493_v6 = vld [vmem:[#allocation7 + $0x70] ss:$8 sps:$4 sm:$0xff]   ;;  %333 = vmatprep.subr.bf16.mxu1 %v1491_v5  ;;  %v1494_v7 = vld [vmem:[#allocation7 + $0x64] ss:$8 sps:$4 sm:$0xff]   ;;  %v1496_v8 = vld [vmem:[#allocation7 + $0x60] ss:$8 sps:$4 sm:$0xff]  }
  0x41   :  { %1449 = vmatprep.subr.bf16.mxu0 %v1786_v0  ;;  %334 = vmatpush1.bf16.msra.mxu1 %v1493_v6  ;;  %v1497_v9 = vld [vmem:[#allocation7 + $0x54] ss:$8 sps:$4 sm:$0xff]   ;;  %v1499_v12 = vld [vmem:[#allocation7 + $0x50] ss:$8 sps:$4 sm:$0xff]   ;;  %v1500_v13 = vld [vmem:[#allocation7 + $0x44] ss:$8 sps:$4 sm:$0xff]  }
  0x42   :  { %335 = vmatprep.subr.bf16.mxu1 %v1494_v7  ;;  %v1486_v10 = vld [vmem:[#allocation5 + $0x18] sm:$0xff]   ;;  %v1487_v11 = vld [vmem:[#allocation5 + $0x10] sm:$0xff]   ;;  %v1502_v14 = vld [vmem:[#allocation7 + $0x40] ss:$8 sps:$4 sm:$0xff]   ;;  %365 = vmatprep.mubr.bf16.mxu1 %v1788_v26  ;;  %s1248_s22 = sshll.u32 %s1789_s21, 4  ;;  %s1249_s22 = int_to_ptr.vmem [resolvable:$true] %s1248_s22 }
  0x43   :  { %v1503_v15 = vld [vmem:[#allocation7 + $0x34] ss:$8 sps:$4 sm:$0xff]   ;;  %v1488_v16 = vld [vmem:[#allocation5 + $0x8] sm:$0xff]   ;;  %v1505_v17 = vld [vmem:[#allocation7 + $0x30] ss:$8 sps:$4 sm:$0xff]   ;;  %p1752_p12 = scmp.lt.s32.totalorder %s1249_s22, %s1249_s22 }
  0x44   :  { %1450 = vmatpush3.bf16.msra.mxu0 %v1483_v2  ;;  %v1506_v18 = vld [vmem:[#allocation7 + $0x24] ss:$8 sps:$4 sm:$0xff]   ;;  %v1490_v20 = vld [vmem:[#allocation2] sm:$0xff]   ;;  %v1508_v21 = vld [vmem:[#allocation7 + $0x20] ss:$8 sps:$4 sm:$0xff]  }
  0x45   :  { %1451 = vmatprep.subr.bf16.mxu0 %v1786_v0  ;;  %336 = vmatpush1.bf16.msra.mxu1 %v1496_v8  ;;  %v1489_v19 = vld [vmem:[#allocation5] sm:$0xff]   ;;  %v1509_v22 = vld [vmem:[#allocation7 + $0x14] ss:$8 sps:$4 sm:$0xff]   ;;  %v1511_v23 = vld [vmem:[#allocation7 + $0x10] ss:$8 sps:$4 sm:$0xff]  }
  0x46   :  { %337 = vmatprep.subr.bf16.mxu1 %v1497_v9  ;;  %v1512_v24 = vld [vmem:[#allocation7 + $0x4] ss:$8 sps:$4 sm:$0xff]   ;;  %v1514_v25 = vld [vmem:[#allocation7] ss:$8 sps:$4 sm:$0xff]   ;;  %v1262_v54 = vld [vmem:[%s1898_s2] ss:$0 sm:$0xff] }
  0x47   :  { %v1515_v27 = vld [vmem:[#allocation8 + $0xe0] ss:$16 sps:$4 sm:$0xff]   ;;  %v1517_v28 = vld [vmem:[#allocation8 + $0xe4] ss:$16 sps:$4 sm:$0xff]   ;;  %v1520_v29 = vld [vmem:[#allocation8 + $0xec] ss:$16 sps:$4 sm:$0xff]  }
  0x48   :  { %1452 = vmatpush3.bf16.msra.mxu0 %v1484_v3  ;;  %v1523_v30 = vld [vmem:[#allocation8 + $0xc4] ss:$16 sps:$4 sm:$0xff]   ;;  %v1521_v31 = vld [vmem:[#allocation8 + $0xc0] ss:$16 sps:$4 sm:$0xff]   ;;  %v1518_v63 = vld [vmem:[#allocation8 + $0xe8] ss:$16 sps:$4 sm:$0xff]  }
  0x49   :  { %1453 = vmatprep.subr.bf16.mxu0 %v1786_v0  ;;  %338 = vmatpush1.bf16.msra.mxu1 %v1499_v12  ;;  %v1529_v32 = vld [vmem:[#allocation8 + $0xa4] ss:$16 sps:$4 sm:$0xff]   ;;  %v1527_v33 = vld [vmem:[#allocation8 + $0xa0] ss:$16 sps:$4 sm:$0xff]   ;;  %v1526_v1 = vld [vmem:[#allocation8 + $0xcc] ss:$16 sps:$4 sm:$0xff]  }
  0x4a   :  { %339 = vmatprep.subr.bf16.mxu1 %v1500_v13  ;;  %v1535_v34 = vld [vmem:[#allocation8 + $0x84] ss:$16 sps:$4 sm:$0xff]   ;;  %v1533_v35 = vld [vmem:[#allocation8 + $0x80] ss:$16 sps:$4 sm:$0xff]   ;;  %v1524_v2 = vld [vmem:[#allocation8 + $0xc8] ss:$16 sps:$4 sm:$0xff]  }
  0x4b   :  { %v1541_v36 = vld [vmem:[#allocation8 + $0x64] ss:$16 sps:$4 sm:$0xff]   ;;  %v1539_v37 = vld [vmem:[#allocation8 + $0x60] ss:$16 sps:$4 sm:$0xff]   ;;  %v1532_v3 = vld [vmem:[#allocation8 + $0xac] ss:$16 sps:$4 sm:$0xff]  }
  0x4c   :  { %1454 = vmatpush3.bf16.msra.mxu0 %v1485_v4  ;;  %v1547_v38 = vld [vmem:[#allocation8 + $0x44] ss:$16 sps:$4 sm:$0xff]   ;;  %v1545_v39 = vld [vmem:[#allocation8 + $0x40] ss:$16 sps:$4 sm:$0xff]   ;;  %v1530_v4 = vld [vmem:[#allocation8 + $0xa8] ss:$16 sps:$4 sm:$0xff]  }
  0x4d   :  { %1455 = vmatprep.subr.bf16.mxu0 %v1786_v0  ;;  %340 = vmatpush1.bf16.msra.mxu1 %v1502_v14  ;;  %v1553_v40 = vld [vmem:[#allocation8 + $0x24] ss:$16 sps:$4 sm:$0xff]   ;;  %v1551_v41 = vld [vmem:[#allocation8 + $0x20] ss:$16 sps:$4 sm:$0xff]   ;;  %v1538_v5 = vld [vmem:[#allocation8 + $0x8c] ss:$16 sps:$4 sm:$0xff]  }
  0x4e   :  { %341 = vmatprep.subr.bf16.mxu1 %v1503_v15  ;;  %v1559_v42 = vld [vmem:[#allocation8 + $0x4] ss:$16 sps:$4 sm:$0xff]   ;;  %v1557_v43 = vld [vmem:[#allocation8] ss:$16 sps:$4 sm:$0xff]   ;;  %v1536_v6 = vld [vmem:[#allocation8 + $0x88] ss:$16 sps:$4 sm:$0xff]  }
  0x4f   :  { %v1565_v44 = vld [vmem:[#allocation8 + $0x1e4] ss:$16 sps:$4 sm:$0xff]   ;;  %v1563_v45 = vld [vmem:[#allocation8 + $0x1e0] ss:$16 sps:$4 sm:$0xff]   ;;  %v1544_v7 = vld [vmem:[#allocation8 + $0x6c] ss:$16 sps:$4 sm:$0xff]  }
  0x50   :  { %1456 = vmatpush3.bf16.msra.mxu0 %v1486_v10  ;;  %v1571_v46 = vld [vmem:[#allocation8 + $0x1c4] ss:$16 sps:$4 sm:$0xff]   ;;  %v1569_v47 = vld [vmem:[#allocation8 + $0x1c0] ss:$16 sps:$4 sm:$0xff]   ;;  %v1542_v8 = vld [vmem:[#allocation8 + $0x68] ss:$16 sps:$4 sm:$0xff]  }
  0x51   :  { %1457 = vmatprep.subr.bf16.mxu0 %v1786_v0  ;;  %342 = vmatpush1.bf16.msra.mxu1 %v1505_v17  ;;  %v1577_v48 = vld [vmem:[#allocation8 + $0x1a4] ss:$16 sps:$4 sm:$0xff]   ;;  %v1575_v49 = vld [vmem:[#allocation8 + $0x1a0] ss:$16 sps:$4 sm:$0xff]   ;;  %v1550_v9 = vld [vmem:[#allocation8 + $0x4c] ss:$16 sps:$4 sm:$0xff]  }
  0x52   :  { %343 = vmatprep.subr.bf16.mxu1 %v1506_v18  ;;  %v1583_v50 = vld [vmem:[#allocation8 + $0x184] ss:$16 sps:$4 sm:$0xff]   ;;  %v1581_v51 = vld [vmem:[#allocation8 + $0x180] ss:$16 sps:$4 sm:$0xff]   ;;  %v1548_v10 = vld [vmem:[#allocation8 + $0x48] ss:$16 sps:$4 sm:$0xff]  }
  0x53   :  { %v1589_v52 = vld [vmem:[#allocation8 + $0x164] ss:$16 sps:$4 sm:$0xff]   ;;  %v1587_v53 = vld [vmem:[#allocation8 + $0x160] ss:$16 sps:$4 sm:$0xff]   ;;  %v1554_v12 = vld [vmem:[#allocation8 + $0x28] ss:$16 sps:$4 sm:$0xff]  }
  0x54   :  { %1458 = vmatpush3.bf16.msra.mxu0 %v1487_v11  ;;  %v1556_v11 = vld [vmem:[#allocation8 + $0x2c] ss:$16 sps:$4 sm:$0xff]   ;;  %v1560_v14 = vld [vmem:[#allocation8 + $0x8] ss:$16 sps:$4 sm:$0xff]  }
  0x55   :  { %1459 = vmatprep.subr.bf16.mxu0 %v1786_v0  ;;  %344 = vmatpush1.bf16.msra.mxu1 %v1508_v21  ;;  %v1562_v13 = vld [vmem:[#allocation8 + $0xc] ss:$16 sps:$4 sm:$0xff]   ;;  %v1572_v18 = vld [vmem:[#allocation8 + $0x1c8] ss:$16 sps:$4 sm:$0xff]  }
  0x56   :  { %345 = vmatprep.subr.bf16.mxu1 %v1509_v22  ;;  %v1568_v15 = vld [vmem:[#allocation8 + $0x1ec] ss:$16 sps:$4 sm:$0xff]   ;;  %v1584_v22 = vld [vmem:[#allocation8 + $0x188] ss:$16 sps:$4 sm:$0xff]  }
  0x57   :  { %v1574_v17 = vld [vmem:[#allocation8 + $0x1cc] ss:$16 sps:$4 sm:$0xff]  }
  0x58   :  { %1460 = vmatpush3.bf16.msra.mxu0 %v1488_v16  ;;  %v1566_v16 = vld [vmem:[#allocation8 + $0x1e8] ss:$16 sps:$4 sm:$0xff]   ;;  %v1586_v21 = vld [vmem:[#allocation8 + $0x18c] ss:$16 sps:$4 sm:$0xff]  }
  0x59   :  { %1461 = vmatprep.subr.bf16.mxu0 %v1786_v0  ;;  %346 = vmatpush1.bf16.msra.mxu1 %v1511_v23  ;;  %v1592_v23 = vld [vmem:[#allocation8 + $0x16c] ss:$16 sps:$4 sm:$0xff]  }
  0x5a   :  { %347 = vmatprep.subr.bf16.mxu1 %v1512_v24  ;;  %v1590_v24 = vld [vmem:[#allocation8 + $0x168] ss:$16 sps:$4 sm:$0xff]   ;;  %v1598_v26 = vld [vmem:[#allocation8 + $0x14c] ss:$16 sps:$4 sm:$0xff]  }
  0x5c   :  { %1462 = vmatpush3.bf16.msra.mxu0 %v1489_v19  ;;  %v1580_v19 = vld [vmem:[#allocation8 + $0x1ac] ss:$16 sps:$4 sm:$0xff]  }
  0x5d   :  { %348 = vmatpush1.bf16.msra.mxu1 %v1514_v25  ;;  %788 = vmatprep.subr.bf16.mxu0 %v1517_v28  ;;  %v1595_v25 = vld [vmem:[#allocation8 + $0x144] ss:$16 sps:$4 sm:$0xff]   ;;  %v1596_v28 = vld [vmem:[#allocation8 + $0x148] ss:$16 sps:$4 sm:$0xff]  }
  0x5e   :  { %831 = vmatprep.subr.bf16.mxu1 %v1520_v29  ;;  %v1601_v29 = vld [vmem:[#allocation8 + $0x124] ss:$16 sps:$4 sm:$0xff]  }
  0x5f   :  { %1464 = vmatmul.mubr.bf16.vlgmr.msra.gmra.mxu0 %v1490_v20  ;;  %v1578_v20 = vld [vmem:[#allocation8 + $0x1a8] ss:$16 sps:$4 sm:$0xff]  }
  0x60   :  { %789 = vmatpush1.bf16.msra.mxu0 %v1515_v27  ;;  %v1593_v27 = vld [vmem:[#allocation8 + $0x140] ss:$16 sps:$4 sm:$0xff]  }
  0x61   :  { %790 = vmatprep.subr.bf16.mxu0 %v1523_v30  ;;  %v1604_v30 = vld [vmem:[#allocation8 + $0x12c] ss:$16 sps:$4 sm:$0xff]  }
  0x64   :  { %791 = vmatpush1.bf16.msra.mxu0 %v1521_v31  ;;  %v1599_v31 = vld [vmem:[#allocation8 + $0x120] ss:$16 sps:$4 sm:$0xff]  }
  0x65   :  { %792 = vmatprep.subr.bf16.mxu0 %v1529_v32  ;;  %v1602_v32 = vld [vmem:[#allocation8 + $0x128] ss:$16 sps:$4 sm:$0xff]  }
  0x68   :  { %793 = vmatpush1.bf16.msra.mxu0 %v1527_v33  ;;  %v1607_v33 = vld [vmem:[#allocation8 + $0x104] ss:$16 sps:$4 sm:$0xff]  }
  0x69   :  { %794 = vmatprep.subr.bf16.mxu0 %v1535_v34  ;;  %v1610_v34 = vld [vmem:[#allocation8 + $0x10c] ss:$16 sps:$4 sm:$0xff]  }
  0x6c   :  { %795 = vmatpush1.bf16.msra.mxu0 %v1533_v35  ;;  %v1605_v35 = vld [vmem:[#allocation8 + $0x100] ss:$16 sps:$4 sm:$0xff]  }
  0x6d   :  { %796 = vmatprep.subr.bf16.mxu0 %v1541_v36  ;;  %v1608_v36 = vld [vmem:[#allocation8 + $0x108] ss:$16 sps:$4 sm:$0xff]  }
  0x70   :  { %797 = vmatpush1.bf16.msra.mxu0 %v1539_v37  ;;  %v1611_v37 = vld [vmem:[#allocation10 + $0x78] sm:$0xff]  }
  0x71   :  { %798 = vmatprep.subr.bf16.mxu0 %v1547_v38  ;;  %v1612_v38 = vld [vmem:[#allocation10 + $0xf8] sm:$0xff]  }
  0x74   :  { %799 = vmatpush1.bf16.msra.mxu0 %v1545_v39  ;;  %v243_v39 = vlaneseq }
  0x75   :  { %800 = vmatprep.subr.bf16.mxu0 %v1553_v40 }
  0x76   :  { %v1867_v40 = vshrl.u32 %v243_v39, 7 }
  0x78   :  { %801 = vmatpush1.bf16.msra.mxu0 %v1551_v41  ;;  %v249_v41 = vsub.s32 1, %v1867_v40 }
  0x79   :  { %802 = vmatprep.subr.bf16.mxu0 %v1559_v42  ;;  %v245_v42 = vsub.s32 0, %v1867_v40 }
  0x7c   :  { %803 = vmatpush1.bf16.msra.mxu0 %v1557_v43  ;;  %v241_v43 = vld [vmem:[%s1900_s4] sm:$0x3] }
  0x7d   :  { %804 = vmatprep.subr.bf16.mxu0 %v1565_v44 }
  0x80   :  { %805 = vmatpush2.bf16.msra.mxu0 %v1563_v45  ;;  %v250_v45 = vrot.slane %v241_v43, %v249_v41 }
  0x81   :  { %806 = vmatprep.subr.bf16.mxu0 %v1571_v46  ;;  %v246_v46 = vrot.slane %v241_v43, %v245_v42 }
  0x84   :  { %807 = vmatpush2.bf16.msra.mxu0 %v1569_v47 }
  0x85   :  { %808 = vmatprep.subr.bf16.mxu0 %v1577_v48 }
  0x88   :  { %809 = vmatpush2.bf16.msra.mxu0 %v1575_v49 }
  0x89   :  { %810 = vmatprep.subr.bf16.mxu0 %v1583_v50 }
  0x8c   :  { %811 = vmatpush2.bf16.msra.mxu0 %v1581_v51 }
  0x8d   :  { %812 = vmatprep.subr.bf16.mxu0 %v1589_v52 }
  0x90   :  { %813 = vmatpush2.bf16.msra.mxu0 %v1587_v53 }
  0x91   :  { %814 = vmatprep.subr.bf16.mxu0 %v1595_v25  ;;  %v1642_v25 = vld [vmem:[#allocation10 + $0x80] sm:$0xff]  }
  0x94   :  { %815 = vmatpush2.bf16.msra.mxu0 %v1593_v27  ;;  %v458_v27 = vsub.s32 2, %v1867_v40 }
  0x95   :  { %816 = vmatprep.subr.bf16.mxu0 %v1601_v29 }
  0x98   :  { %817 = vmatpush2.bf16.msra.mxu0 %v1599_v31 }
  0x99   :  { %818 = vmatprep.subr.bf16.mxu0 %v1607_v33 }
  0x9c   :  { %819 = vmatpush2.bf16.msra.mxu0 %v1605_v35 }
  0x9d   :  { %1403 = vmatprep.subr.bf16.mxu0 %v1611_v37 }
 0x11f   :  { %v215_v55 = vpop.f32.mrf.mxu0 }
 0x120   :  { %v216_v57 = vadd.f32 %v1262_v54, %v215_v55 }
 0x121   :  { %v1465_v56 = vpop.f32.mrf.mxu0 }
 0x122   :  { %v222_v61 = vmax.f32 %v216_v57, 0.0 }
 0x123   :  { %v218_v58 = vpop.f32.mrf.mxu0 }
 0x124   :  { %v219_v59 = vadd.f32 %v1262_v54, %v218_v58 }
 0x125   :  { %v1466_v60 = vpop.f32.mrf.mxu0 }
 0x126   :  { %v223_v62 = vmax.f32 %v219_v59, 0.0  ;;  %v1613_v59 = vld [vmem:[#allocation10 + $0x38] sm:$0xff]  }
 0x127   :  { %v1614_v60 = vld [vmem:[#allocation10 + $0xb8] sm:$0xff]  }
 0x128   :  { %v224_v0 = vpack.c.bf16 %v223_v62, %v222_v61  ;;  %v1615_v62 = vld [vmem:[#allocation10 + $0x70] sm:$0xff]  }
 0x12a   :  { %366 = vmatmul.mubr.bf16.vlgmr.msra.gmra.mxu1 %v224_v0  ;;  %v1617_v0 = vld [vmem:[#allocation10 + $0x30] sm:$0xff]  }
 0x12b   :  { %832 = vmatpush1.bf16.msra.mxu1 %v1518_v63  ;;  %v1616_v63 = vld [vmem:[#allocation10 + $0xf0] sm:$0xff]  }
 0x12c   :  { %833 = vmatprep.subr.bf16.mxu1 %v1526_v1  ;;  %v1618_v1 = vld [vmem:[#allocation10 + $0xb0] sm:$0xff]  }
 0x12f   :  { %834 = vmatpush1.bf16.msra.mxu1 %v1524_v2  ;;  %v1619_v2 = vld [vmem:[#allocation10 + $0x68] sm:$0xff]  }
 0x130   :  { %835 = vmatprep.subr.bf16.mxu1 %v1532_v3  ;;  %v1620_v3 = vld [vmem:[#allocation10 + $0xe8] sm:$0xff]  }
 0x133   :  { %836 = vmatpush1.bf16.msra.mxu1 %v1530_v4  ;;  %v1621_v4 = vld [vmem:[#allocation10 + $0x28] sm:$0xff]  }
 0x134   :  { %837 = vmatprep.subr.bf16.mxu1 %v1538_v5  ;;  %v1622_v5 = vld [vmem:[#allocation10 + $0xa8] sm:$0xff]  }
 0x137   :  { %838 = vmatpush1.bf16.msra.mxu1 %v1536_v6  ;;  %v1623_v6 = vld [vmem:[#allocation10 + $0x60] sm:$0xff]  }
 0x138   :  { %839 = vmatprep.subr.bf16.mxu1 %v1544_v7  ;;  %v1624_v7 = vld [vmem:[#allocation10 + $0xe0] sm:$0xff]  }
 0x13b   :  { %840 = vmatpush1.bf16.msra.mxu1 %v1542_v8  ;;  %v1625_v8 = vld [vmem:[#allocation10 + $0x20] sm:$0xff]  }
 0x13c   :  { %841 = vmatprep.subr.bf16.mxu1 %v1550_v9  ;;  %v1626_v9 = vld [vmem:[#allocation10 + $0xa0] sm:$0xff]  }
 0x13f   :  { %842 = vmatpush1.bf16.msra.mxu1 %v1548_v10  ;;  %v1627_v10 = vld [vmem:[#allocation10 + $0x58] sm:$0xff]  }
 0x140   :  { %843 = vmatprep.subr.bf16.mxu1 %v1556_v11  ;;  %v1628_v11 = vld [vmem:[#allocation10 + $0xd8] sm:$0xff]  }
 0x143   :  { %844 = vmatpush1.bf16.msra.mxu1 %v1554_v12  ;;  %v1629_v12 = vld [vmem:[#allocation10 + $0x18] sm:$0xff]  }
 0x144   :  { %845 = vmatprep.subr.bf16.mxu1 %v1562_v13  ;;  %v1630_v13 = vld [vmem:[#allocation10 + $0x98] sm:$0xff]  }
 0x147   :  { %846 = vmatpush1.bf16.msra.mxu1 %v1560_v14  ;;  %v1631_v14 = vld [vmem:[#allocation10 + $0x50] sm:$0xff]  }
 0x148   :  { %847 = vmatprep.subr.bf16.mxu1 %v1568_v15  ;;  %v1632_v15 = vld [vmem:[#allocation10 + $0xd0] sm:$0xff]  }
 0x14b   :  { %848 = vmatpush2.bf16.msra.mxu1 %v1566_v16  ;;  %v1633_v16 = vld [vmem:[#allocation10 + $0x10] sm:$0xff]  }
 0x14c   :  { %849 = vmatprep.subr.bf16.mxu1 %v1574_v17  ;;  %v1634_v17 = vld [vmem:[#allocation10 + $0x90] sm:$0xff]  }
 0x14f   :  { %850 = vmatpush2.bf16.msra.mxu1 %v1572_v18  ;;  %v1635_v18 = vld [vmem:[#allocation10 + $0x48] sm:$0xff]  }
 0x150   :  { %851 = vmatprep.subr.bf16.mxu1 %v1580_v19  ;;  %v1636_v19 = vld [vmem:[#allocation10 + $0xc8] sm:$0xff]  }
 0x153   :  { %852 = vmatpush2.bf16.msra.mxu1 %v1578_v20  ;;  %v1637_v20 = vld [vmem:[#allocation10 + $0x8] sm:$0xff]  }
 0x154   :  { %853 = vmatprep.subr.bf16.mxu1 %v1586_v21  ;;  %v1638_v21 = vld [vmem:[#allocation10 + $0x88] sm:$0xff]  }
 0x157   :  { %854 = vmatpush2.bf16.msra.mxu1 %v1584_v22  ;;  %v1639_v22 = vld [vmem:[#allocation10 + $0x40] sm:$0xff]  }
 0x158   :  { %855 = vmatprep.subr.bf16.mxu1 %v1592_v23  ;;  %v1640_v23 = vld [vmem:[#allocation10 + $0xc0] sm:$0xff]  }
 0x15b   :  { %856 = vmatpush2.bf16.msra.mxu1 %v1590_v24  ;;  %v1641_v24 = vld [vmem:[#allocation10] sm:$0xff]  }
 0x15c   :  { %857 = vmatprep.subr.bf16.mxu1 %v1598_v26  ;;  %v462_v26 = vsub.s32 3, %v1867_v40 }
 0x15f   :  { %858 = vmatpush2.bf16.msra.mxu1 %v1596_v28  ;;  %v446_v28 = vld [vmem:[%s1902_s6] sm:$0xf] }
 0x160   :  { %859 = vmatprep.subr.bf16.mxu1 %v1604_v30  ;;  %v455_v31 = vrot.slane %v446_v28, %v249_v41  ;;  %v451_v33 = vrot.slane %v446_v28, %v245_v42 }
 0x163   :  { %860 = vmatpush2.bf16.msra.mxu1 %v1602_v32  ;;  %v463_v32 = vrot.slane %v446_v28, %v462_v26 }
 0x164   :  { %861 = vmatprep.subr.bf16.mxu1 %v1610_v34  ;;  %v459_v34 = vrot.slane %v446_v28, %v458_v27 }
 0x167   :  { %862 = vmatpush2.bf16.msra.mxu1 %v1608_v36 }
 0x168   :  { %1425 = vmatprep.subr.bf16.mxu1 %v1612_v38 }
 0x1ea   :  { %v367_v44 = vpop.f32.mrf.mxu1 }
 0x1eb   :  { %v368_v51 = vadd.f32 %v367_v44, %v246_v46 }
 0x1ec   :  { %v369_v47 = vpop.f32.mrf.mxu1 }
 0x1ed   :  { %v370_v49 = vadd.f32 %v369_v47, %v250_v45  ;;  %v376_v57 = vmax.f32 %v368_v51, 0.0 }
 0x1ee   :  { %v371_v48 = vpop.f32.mrf.mxu1 }
 0x1ef   :  { %v372_v50 = vadd.f32 %v371_v48, %v246_v46  ;;  %v377_v55 = vmax.f32 %v370_v49, 0.0 }
 0x1f0   :  { %v373_v52 = vpop.f32.mrf.mxu1 }
 0x1f1   :  { %v374_v53 = vadd.f32 %v373_v52, %v250_v45  ;;  %v378_v54 = vmax.f32 %v372_v50, 0.0 }
 0x1f3   :  { %v379_v56 = vmax.f32 %v374_v53, 0.0  ;;  %v380_v61 = vpack.c.bf16 %v378_v54, %v376_v57 }
 0x1f5   :  { %v381_v58 = vpack.c.bf16 %v379_v56, %v377_v55 }
 0x1f7   :  { %820 = vmatprep.mubr.bf16.mxu0 %v381_v58  ;;  %863 = vmatprep.mubr.bf16.mxu1 %v381_v58 }
 0x1f8   :  { %821 = vmatmul.mubr.bf16.vlgmr.msra.gmra.mxu0 %v380_v61  ;;  %864 = vmatmul.mubr.bf16.vlgmr.msra.gmra.mxu1 %v380_v61 }
 0x1f9   :  { %1404 = vmatpush3.bf16.msra.mxu0 %v1613_v59  ;;  %1426 = vmatpush3.bf16.msra.mxu1 %v1614_v60 }
 0x1fa   :  { %1405 = vmatprep.subr.bf16.mxu0 %v1615_v62  ;;  %1427 = vmatprep.subr.bf16.mxu1 %v1616_v63  ;;  %v1352_v63 = vld [vmem:[%s1904_s8] ss:$0 sm:$0xff]  ;;  %s1747_s8 = scalar_lea.vmem %s1249_s22, 128 }
 0x1fb   :  { %p1748_p11 = scmp.ne.s32.totalorder %s1249_s22, %s1747_s8  ;;  %p1753_p13 = scmp.lt.s32.totalorder %s1747_s8, %s1747_s8 }
 0x1fd   :  { %1406 = vmatpush3.bf16.msra.mxu0 %v1617_v0  ;;  %1428 = vmatpush3.bf16.msra.mxu1 %v1618_v1  ;;  %p1754_p0 = por %p1753_p13, %p1752_p12 }
 0x1fe   :  { %1407 = vmatprep.subr.bf16.mxu0 %v1619_v2  ;;  %1429 = vmatprep.subr.bf16.mxu1 %v1620_v3 }
 0x1ff   :  { %p1755_p1 = pnand %p1754_p0, %p1748_p11 }
 0x201   :  { %1408 = vmatpush3.bf16.msra.mxu0 %v1621_v4  ;;  %1430 = vmatpush3.bf16.msra.mxu1 %v1622_v5 }
 0x202   :  { %1409 = vmatprep.subr.bf16.mxu0 %v1623_v6  ;;  %1431 = vmatprep.subr.bf16.mxu1 %v1624_v7 }
 0x205   :  { %1410 = vmatpush3.bf16.msra.mxu0 %v1625_v8  ;;  %1432 = vmatpush3.bf16.msra.mxu1 %v1626_v9 }
 0x206   :  { %1411 = vmatprep.subr.bf16.mxu0 %v1627_v10  ;;  %1433 = vmatprep.subr.bf16.mxu1 %v1628_v11 }
 0x209   :  { %1412 = vmatpush3.bf16.msra.mxu0 %v1629_v12  ;;  %1434 = vmatpush3.bf16.msra.mxu1 %v1630_v13 }
 0x20a   :  { %1413 = vmatprep.subr.bf16.mxu0 %v1631_v14  ;;  %1435 = vmatprep.subr.bf16.mxu1 %v1632_v15 }
 0x20d   :  { %1414 = vmatpush3.bf16.msra.mxu0 %v1633_v16  ;;  %1436 = vmatpush3.bf16.msra.mxu1 %v1634_v17 }
 0x20e   :  { %1415 = vmatprep.subr.bf16.mxu0 %v1635_v18  ;;  %1437 = vmatprep.subr.bf16.mxu1 %v1636_v19 }
 0x211   :  { %1416 = vmatpush3.bf16.msra.mxu0 %v1637_v20  ;;  %1438 = vmatpush3.bf16.msra.mxu1 %v1638_v21 }
 0x212   :  { %1417 = vmatprep.subr.bf16.mxu0 %v1639_v22  ;;  %1439 = vmatprep.subr.bf16.mxu1 %v1640_v23 }
 0x215   :  { %1418 = vmatpush3.bf16.msra.mxu0 %v1641_v24  ;;  %1440 = vmatpush3.bf16.msra.mxu1 %v1642_v25 }
 0x2b8   :  { %v822_v29 = vpop.f32.mrf.mxu0  ;;  %v865_v30 = vpop.f32.mrf.mxu1 }
 0x2b9   :  { %v823_v46 = vadd.f32 %v822_v29, %v451_v33  ;;  %v866_v47 = vadd.f32 %v865_v30, %v459_v34 }
 0x2ba   :  { %v824_v35 = vpop.f32.mrf.mxu0  ;;  %v867_v36 = vpop.f32.mrf.mxu1 }
 0x2bb   :  { %v825_v39 = vadd.f32 %v824_v35, %v455_v31  ;;  %v868_v43 = vadd.f32 %v867_v36, %v463_v32  ;;  %v874_v55 = vmax.f32 %v823_v46, 0.0  ;;  %v876_v56 = vmax.f32 %v866_v47, 0.0 }
 0x2bc   :  { %v826_v37 = vpop.f32.mrf.mxu0  ;;  %v869_v38 = vpop.f32.mrf.mxu1 }
 0x2bd   :  { %v827_v44 = vadd.f32 %v826_v37, %v451_v33  ;;  %v870_v45 = vadd.f32 %v869_v38, %v459_v34  ;;  %v875_v53 = vmax.f32 %v825_v39, 0.0  ;;  %v877_v40 = vmax.f32 %v868_v43, 0.0 }
 0x2be   :  { %v828_v48 = vpop.f32.mrf.mxu0  ;;  %v871_v49 = vpop.f32.mrf.mxu1 }
 0x2bf   :  { %v829_v50 = vadd.f32 %v828_v48, %v455_v31  ;;  %v872_v51 = vadd.f32 %v871_v49, %v463_v32  ;;  %v878_v41 = vmax.f32 %v827_v44, 0.0  ;;  %v880_v52 = vmax.f32 %v870_v45, 0.0 }
 0x2c1   :  { %v879_v42 = vmax.f32 %v829_v50, 0.0  ;;  %v881_v54 = vmax.f32 %v872_v51, 0.0  ;;  %v882_v59 = vpack.c.bf16 %v878_v41, %v874_v55  ;;  %v884_v60 = vpack.c.bf16 %v880_v52, %v876_v56 }
 0x2c3   :  { %v883_v57 = vpack.c.bf16 %v879_v42, %v875_v53  ;;  %v885_v58 = vpack.c.bf16 %v881_v54, %v877_v40 }
 0x2c5   :  { %1181 = vmatprep.mubr.bf16.mxu0 %v883_v57  ;;  %1222 = vmatprep.mubr.bf16.mxu1 %v885_v58 }
 0x2c6   :  { %1182 = vmatmul.mubr.bf16.vlgmr.msra.gmra.mxu0 %v882_v59  ;;  %1223 = vmatmul.mubr.bf16.vlgmr.msra.gmra.mxu1 %v884_v60 }
 0x386   :  { %v1419_v61 = vpop.f32.mrf.mxu0  ;;  %v1441_v62 = vpop.f32.mrf.mxu1 }
 0x388   :  { %v1420_v0 = vpop.f32.mrf.mxu0  ;;  %v1442_v1 = vpop.f32.mrf.mxu1 }
 0x389   :  { %v1421_v2 = vadd.f32 %v1420_v0, %v1419_v61  ;;  %v1443_v6 = vadd.f32 %v1442_v1, %v1441_v62 }
 0x38a   :  { %v1422_v3 = vpop.f32.mrf.mxu0  ;;  %v1444_v4 = vpop.f32.mrf.mxu1 }
 0x38b   :  { %v1184_v5 = vadd.f32 %v1421_v2, %v1352_v63 }
 0x38c   :  { %v1423_v7 = vpop.f32.mrf.mxu0  ;;  %v1445_v8 = vpop.f32.mrf.mxu1 }
 0x38d   :  { %v1424_v9 = vadd.f32 %v1423_v7, %v1422_v3  ;;  %v1225_v10 = vadd.f32 %v1443_v6, %v1184_v5  ;;  %v1446_v12 = vadd.f32 %v1445_v8, %v1444_v4 }
 0x38f   :  { %v1187_v11 = vadd.f32 %v1424_v9, %v1352_v63  ;;  %1643 = vtanh.f32 %v1225_v10 }
 0x391   :  { %v1228_v13 = vadd.f32 %v1446_v12, %v1187_v11 }
 0x393   :  { %1645 = vtanh.f32 %v1228_v13 }
 0x39c   :  { %v1644_v14 = vpop.eup %1643 }
 0x3a0   :  { %v1646_v15 = vpop.eup %1645 }
 0x3a1   :  { %v1392_v16 = vpack.c.bf16 %v1646_v15, %v1644_v14 }
 0x3a3   :  { %1393 = vst [vmem:[#allocation11] sm:$0xff] %v1392_v16  }
 0x3a4   :  { %1758 = shalt.err (!%p1755_p1)
}
 0x3a5   :  { %1254 = dma.vmem_to_hbm [thread:$0]  %s1249_s22, 128, %s1905_s9, [#allocation4], %s1777_s14, %s1777_s14, %s1778_s15  }
 0x3a6   :  { %1773 = dma.done.wait [#allocation4], 128  }
 0x3a7   :  { %1774 = vsyncadd [#allocation4], 4294967168 }
 0x3a8   :  { %1258 = vsyncpa [#allocation3], 1 }
 0x3a9   :  { %1259 = vsyncpa [#allocation6], 1 }
 0x3aa   :  { %1260 = vsyncpa [#allocation9], 1 }
 0x3ab   :  { %1261 = vsyncpa [#allocation4], 1 }

</bundles_post_ra>
